<compile_context>
chip_gen: v7x
topology: tpu7x:2x2x1
jax: 0.10.0
libtpu: 0.0.40
codegen_flags: <defaults>
</compile_context>

<pallas_src>
import jax
import jax.numpy as jnp
from jax.experimental import pallas as pl
from jax.experimental.pallas import tpu as pltpu

_LANE = 128     # vreg lane width (last dim)
_SUBLANE = 8    # f32 sublane granularity (second-to-last dim)


def _round_up(x, m):
    return ((x + m - 1) // m) * m


def actor_kernel(x_ref, w1_ref, b1_ref, w2_ref, b2_ref, w3_ref, b3_ref, out_ref):
    """Fused Linear->Tanh->Linear->Tanh->Linear->Softmax forward pass."""
    x = x_ref[...]                                                     # (TB, S_p) f32

    # Hidden layers: bf16 MXU matmuls, f32 accumulation, EUP tanh.
    h1 = jnp.tanh(
        jnp.dot(x.astype(jnp.bfloat16), w1_ref[...],
                preferred_element_type=jnp.float32) + b1_ref[...])     # (TB, H_p)
    h2 = jnp.tanh(
        jnp.dot(h1.astype(jnp.bfloat16), w2_ref[...],
                preferred_element_type=jnp.float32) + b2_ref[...])     # (TB, H_p)

    # Output layer. Padded W3 columns are zero and padded b3 lanes are -1e30,
    # so padded logits are exactly -1e30 and exp() underflows to exactly 0:
    # no in-kernel action mask needed.
    logits = (jnp.dot(h2.astype(jnp.bfloat16), w3_ref[...],
                      preferred_element_type=jnp.float32) + b3_ref[...])  # (TB, A_p)

    m = jnp.max(logits, axis=-1, keepdims=True)
    e = jnp.exp(logits - m)
    denom = jnp.sum(e, axis=-1, keepdims=True)
    # Exact normalization (approx reciprocal is not accurate enough for
    # downstream Categorical sampling or tight validation).
    out_ref[...] = e / denom                                           # lane-dense store


def init_params(key, state_dim, hidden_dim, action_dim):
    """PyTorch-Linear-like uniform init, f32 (the 'module parameters')."""
    ks = jax.random.split(key, 6)

    def lin(kw, kb, fan_in, fan_out):
        bound = 1.0 / jnp.sqrt(fan_in)
        w = jax.random.uniform(kw, (fan_in, fan_out), jnp.float32, -bound, bound)
        b = jax.random.uniform(kb, (1, fan_out), jnp.float32, -bound, bound)
        return w, b

    w1, b1 = lin(ks[0], ks[1], state_dim, hidden_dim)
    w2, b2 = lin(ks[2], ks[3], hidden_dim, hidden_dim)
    w3, b3 = lin(ks[4], ks[5], hidden_dim, action_dim)
    return (w1, b1, w2, b2, w3, b3)


def prepare_params(params):
    """ONE-TIME (init / param-load time) padding + bf16 cast of the parameters.

    Hoisted out of actor_forward per the perf review: feature dims are padded
    to 128 lanes, weights are cast to bf16 (MXU-native), biases stay f32, and
    the action mask is baked into b3 (-1e30 in the padded lanes -> exp == 0).
    """
    w1, b1, w2, b2, w3, b3 = params
    S, H = w1.shape
    A = w3.shape[1]
    S_p = _round_up(S, _LANE)
    H_p = _round_up(H, _LANE)
    A_p = _round_up(A, _LANE)

    def pad2(a, rows, cols, val=0.0):
        return jnp.pad(a, ((0, rows - a.shape[0]), (0, cols - a.shape[1])),
                       constant_values=val)

    w1_p = pad2(w1, S_p, H_p).astype(jnp.bfloat16)      # (S_p, H_p) bf16
    w2_p = pad2(w2, H_p, H_p).astype(jnp.bfloat16)      # (H_p, H_p) bf16
    w3_p = pad2(w3, H_p, A_p).astype(jnp.bfloat16)      # (H_p, A_p) bf16, pad cols = 0
    b1_p = pad2(b1, 1, H_p)                             # (1, H_p) f32
    b2_p = pad2(b2, 1, H_p)                             # (1, H_p) f32
    b3_p = pad2(b3, 1, A_p, val=-1e30)                  # (1, A_p) f32, pad lanes = -1e30
    return (w1_p, b1_p, w2_p, b2_p, w3_p, b3_p)


def actor_forward(state, padded_params, num_actions, *, tile_b=512):
    """state: (B, S) f32. Returns action probabilities (B, num_actions) f32."""
    w1_p, b1_p, w2_p, b2_p, w3_p, b3_p = padded_params
    B, S = state.shape
    S_p, H_p = w1_p.shape
    A_p = w3_p.shape[1]

    # Batch tile at f32 sublane granularity (8 rows): B=16 -> one (16, S_p)
    # block, no 128-row over-padding. For big rollout batches, tile_b rows per
    # step (default 512) amortize the ~0.35us/step pipeline overhead and the
    # multiple "parallel" grid steps shard across both TensorCores on v7x.
    tb = min(_round_up(tile_b, _SUBLANE), _round_up(B, _SUBLANE))
    B_p = _round_up(B, tb)
    x = state
    if (B_p, S_p) != (B, S):
        x = jnp.pad(state, ((0, B_p - B), (0, S_p - S)))   # activation pad only

    grid = (B_p // tb,)
    # Weights/biases: full tensor, constant index_map -> DMAed once, resident
    # across all grid steps.
    full = lambda shape: pl.BlockSpec(shape, lambda i: (0, 0))

    out_p = pl.pallas_call(
        actor_kernel,
        out_shape=jax.ShapeDtypeStruct((B_p, A_p), jnp.float32),
        grid=grid,
        in_specs=[
            pl.BlockSpec((tb, S_p), lambda i: (i, 0)),   # state tile
            full(w1_p.shape), full(b1_p.shape),          # W1, b1
            full(w2_p.shape), full(b2_p.shape),          # W2, b2
            full(w3_p.shape), full(b3_p.shape),          # W3, b3
        ],
        out_specs=pl.BlockSpec((tb, A_p), lambda i: (i, 0)),   # lane-dense store
        compiler_params=pltpu.CompilerParams(
            dimension_semantics=("parallel",)),
    )(x, w1_p, b1_p, w2_p, b2_p, w3_p, b3_p)

    return out_p[:B, :num_actions]


def actor_reference_f32(state, params):
    """Pure f32 reference (the PyTorch module's math)."""
    w1, b1, w2, b2, w3, b3 = params
    h1 = jnp.tanh(state @ w1 + b1)
    h2 = jnp.tanh(h1 @ w2 + b2)
    return jax.nn.softmax(h2 @ w3 + b3, axis=-1)


def actor_reference_mixed(state, params):
    """Reference at the kernel's precision: bf16 matmul operands, f32 accum."""
    w1, b1, w2, b2, w3, b3 = params
    dot = lambda a, w: jnp.dot(a.astype(jnp.bfloat16), w.astype(jnp.bfloat16),
                               preferred_element_type=jnp.float32)
    h1 = jnp.tanh(dot(state, w1) + b1)
    h2 = jnp.tanh(dot(h1, w2) + b2)
    return jax.nn.softmax(dot(h2, w3) + b3, axis=-1)


if __name__ == "__main__":
    B, S, H, A = 16, 32, 64, 8

    key = jax.random.PRNGKey(0)
    k_state, k_params = jax.random.split(key)
    state = jax.random.normal(k_state, (B, S), dtype=jnp.float32)

    params = init_params(k_params, S, H, A)
    padded_params = prepare_params(params)       # one-time, hoisted out of forward

    probs = jax.block_until_ready(actor_forward(state, padded_params, A))
    assert probs.shape == (B, A)

    # Tight check against a reference computed at the kernel's precision
    # (bf16 matmul operands, f32 accumulation, exact softmax).
    ref_mixed = actor_reference_mixed(state, params)
    assert jnp.allclose(probs, ref_mixed, atol=1e-4, rtol=1e-4), \
        "mismatch vs mixed-precision reference"

    # Sanity check against the pure-f32 reference: only bf16 weight/activation
    # quantization separates them (a few 1e-3 at most at these shapes).
    ref_f32 = actor_reference_f32(state, params)
    assert jnp.allclose(probs, ref_f32, atol=1e-2, rtol=5e-2), \
        "mismatch vs f32 reference"

    # Softmax rows normalize exactly (exact reciprocal in the kernel).
    assert jnp.allclose(jnp.sum(probs, axis=-1), 1.0, atol=1e-5), \
        "softmax not normalized"

    print("KERNEL_OK")
</pallas_src>

<mosaic_0001>
module attributes {stable_mosaic.version = 11 : i64} {
  func.func @actor_kernel(%arg0: i32, %arg1: memref<16x128xf32, #tpu.memory_space<vmem>>, %arg2: memref<128x128xbf16, #tpu.memory_space<vmem>>, %arg3: memref<1x128xf32, #tpu.memory_space<vmem>>, %arg4: memref<128x128xbf16, #tpu.memory_space<vmem>>, %arg5: memref<1x128xf32, #tpu.memory_space<vmem>>, %arg6: memref<128x128xbf16, #tpu.memory_space<vmem>>, %arg7: memref<1x128xf32, #tpu.memory_space<vmem>>, %arg8: memref<16x128xf32, #tpu.memory_space<vmem>>) attributes {dimension_semantics = [#tpu.dimension_semantics<parallel>], iteration_bounds = array<i64: 1>, scalar_prefetch = 0 : i64, scratch_operands = 0 : i64, tpu.core_type = #tpu.core_type<tc>, window_params = [{transform_indices = @transform_0, window_bounds = array<i64: 16, 128>}, {pipeline_mode = #tpu.pipeline_mode<synchronous>, transform_indices = @transform_1, window_bounds = array<i64: 128, 128>}, {pipeline_mode = #tpu.pipeline_mode<synchronous>, transform_indices = @transform_2, window_bounds = array<i64: 1, 128>}, {pipeline_mode = #tpu.pipeline_mode<synchronous>, transform_indices = @transform_3, window_bounds = array<i64: 128, 128>}, {pipeline_mode = #tpu.pipeline_mode<synchronous>, transform_indices = @transform_4, window_bounds = array<i64: 1, 128>}, {pipeline_mode = #tpu.pipeline_mode<synchronous>, transform_indices = @transform_5, window_bounds = array<i64: 128, 128>}, {pipeline_mode = #tpu.pipeline_mode<synchronous>, transform_indices = @transform_6, window_bounds = array<i64: 1, 128>}, {transform_indices = @transform_7, window_bounds = array<i64: 16, 128>}]} {
    %c0 = arith.constant 0 : index
    %c0_0 = arith.constant 0 : index
    %0 = vector.load %arg1[%c0, %c0_0] : memref<16x128xf32, #tpu.memory_space<vmem>>, vector<16x128xf32>
    %1 = arith.truncf %0 : vector<16x128xf32> to vector<16x128xbf16>
    %c0_1 = arith.constant 0 : index
    %c0_2 = arith.constant 0 : index
    %2 = vector.load %arg2[%c0_1, %c0_2] : memref<128x128xbf16, #tpu.memory_space<vmem>>, vector<128x128xbf16>
    %cst = arith.constant dense<0.000000e+00> : vector<16x128xf32>
    %3 = tpu.matmul %1, %2, %cst {dimension_numbers = #tpu.dot_dimension_numbers<[1], [0], [0], [1], [0, 0, 1, 1], [], []>} : vector<16x128xbf16>, vector<128x128xbf16>, vector<16x128xf32> -> vector<16x128xf32>
    %c0_3 = arith.constant 0 : index
    %c0_4 = arith.constant 0 : index
    %4 = vector.load %arg3[%c0_3, %c0_4] : memref<1x128xf32, #tpu.memory_space<vmem>>, vector<1x128xf32>
    %5 = vector.broadcast %4 : vector<1x128xf32> to vector<16x128xf32>
    %6 = arith.addf %3, %5 : vector<16x128xf32>
    %7 = math.tanh %6 : vector<16x128xf32>
    %8 = arith.truncf %7 : vector<16x128xf32> to vector<16x128xbf16>
    %c0_5 = arith.constant 0 : index
    %c0_6 = arith.constant 0 : index
    %9 = vector.load %arg4[%c0_5, %c0_6] : memref<128x128xbf16, #tpu.memory_space<vmem>>, vector<128x128xbf16>
    %cst_7 = arith.constant dense<0.000000e+00> : vector<16x128xf32>
    %10 = tpu.matmul %8, %9, %cst_7 {dimension_numbers = #tpu.dot_dimension_numbers<[1], [0], [0], [1], [0, 0, 1, 1], [], []>} : vector<16x128xbf16>, vector<128x128xbf16>, vector<16x128xf32> -> vector<16x128xf32>
    %c0_8 = arith.constant 0 : index
    %c0_9 = arith.constant 0 : index
    %11 = vector.load %arg5[%c0_8, %c0_9] : memref<1x128xf32, #tpu.memory_space<vmem>>, vector<1x128xf32>
    %12 = vector.broadcast %11 : vector<1x128xf32> to vector<16x128xf32>
    %13 = arith.addf %10, %12 : vector<16x128xf32>
    %14 = math.tanh %13 : vector<16x128xf32>
    %15 = arith.truncf %14 : vector<16x128xf32> to vector<16x128xbf16>
    %c0_10 = arith.constant 0 : index
    %c0_11 = arith.constant 0 : index
    %16 = vector.load %arg6[%c0_10, %c0_11] : memref<128x128xbf16, #tpu.memory_space<vmem>>, vector<128x128xbf16>
    %cst_12 = arith.constant dense<0.000000e+00> : vector<16x128xf32>
    %17 = tpu.matmul %15, %16, %cst_12 {dimension_numbers = #tpu.dot_dimension_numbers<[1], [0], [0], [1], [0, 0, 1, 1], [], []>} : vector<16x128xbf16>, vector<128x128xbf16>, vector<16x128xf32> -> vector<16x128xf32>
    %c0_13 = arith.constant 0 : index
    %c0_14 = arith.constant 0 : index
    %18 = vector.load %arg7[%c0_13, %c0_14] : memref<1x128xf32, #tpu.memory_space<vmem>>, vector<1x128xf32>
    %19 = vector.broadcast %18 : vector<1x128xf32> to vector<16x128xf32>
    %20 = arith.addf %17, %19 : vector<16x128xf32>
    %cst_15 = arith.constant dense<0xFF800000> : vector<16xf32>
    %21 = vector.multi_reduction <maximumf>, %20, %cst_15 [1] : vector<16x128xf32> to vector<16xf32>
    %22 = vector.shape_cast %21 : vector<16xf32> to vector<16x1xf32>
    %23 = vector.broadcast %22 : vector<16x1xf32> to vector<16x128xf32>
    %24 = arith.subf %20, %23 : vector<16x128xf32>
    %25 = math.exp %24 : vector<16x128xf32>
    %cst_16 = arith.constant dense<0.000000e+00> : vector<16xf32>
    %26 = vector.multi_reduction <add>, %25, %cst_16 [1] : vector<16x128xf32> to vector<16xf32>
    %27 = vector.shape_cast %26 : vector<16xf32> to vector<16x1xf32>
    %28 = vector.broadcast %27 : vector<16x1xf32> to vector<16x128xf32>
    %29 = arith.divf %25, %28 : vector<16x128xf32>
    %c0_17 = arith.constant 0 : index
    %c0_18 = arith.constant 0 : index
    %30 = vector.load %arg8[%c0_17, %c0_18] : memref<16x128xf32, #tpu.memory_space<vmem>>, vector<16x128xf32>
    tpu.vector_store %arg8[%c0_17, %c0_18], %29 {strides = array<i32>} : memref<16x128xf32, #tpu.memory_space<vmem>>, vector<16x128xf32>,
    return
  }
  func.func @transform_0(%arg0: i32) -> (i32, i32) {
    %c0_i32 = arith.constant 0 : i32
    %c0_i32_0 = arith.constant 0 : i32
    return %arg0, %c0_i32 : i32, i32
  }
  func.func @transform_1(%arg0: i32) -> (i32, i32) {
    %c0_i32 = arith.constant 0 : i32
    %c0_i32_0 = arith.constant 0 : i32
    %c0_i32_1 = arith.constant 0 : i32
    return %c0_i32, %c0_i32_0 : i32, i32
  }
  func.func @transform_2(%arg0: i32) -> (i32, i32) {
    %c0_i32 = arith.constant 0 : i32
    %c0_i32_0 = arith.constant 0 : i32
    %c0_i32_1 = arith.constant 0 : i32
    return %c0_i32, %c0_i32_0 : i32, i32
  }
  func.func @transform_3(%arg0: i32) -> (i32, i32) {
    %c0_i32 = arith.constant 0 : i32
    %c0_i32_0 = arith.constant 0 : i32
    %c0_i32_1 = arith.constant 0 : i32
    return %c0_i32, %c0_i32_0 : i32, i32
  }
  func.func @transform_4(%arg0: i32) -> (i32, i32) {
    %c0_i32 = arith.constant 0 : i32
    %c0_i32_0 = arith.constant 0 : i32
    %c0_i32_1 = arith.constant 0 : i32
    return %c0_i32, %c0_i32_0 : i32, i32
  }
  func.func @transform_5(%arg0: i32) -> (i32, i32) {
    %c0_i32 = arith.constant 0 : i32
    %c0_i32_0 = arith.constant 0 : i32
    %c0_i32_1 = arith.constant 0 : i32
    return %c0_i32, %c0_i32_0 : i32, i32
  }
  func.func @transform_6(%arg0: i32) -> (i32, i32) {
    %c0_i32 = arith.constant 0 : i32
    %c0_i32_0 = arith.constant 0 : i32
    %c0_i32_1 = arith.constant 0 : i32
    return %c0_i32, %c0_i32_0 : i32, i32
  }
  func.func @transform_7(%arg0: i32) -> (i32, i32) {
    %c0_i32 = arith.constant 0 : i32
    %c0_i32_0 = arith.constant 0 : i32
    return %arg0, %c0_i32 : i32, i32
  }
}

</mosaic_0001>

<bundles_post_ra>
// kernel: tpu_custom_call.1
= control target key start
LH: loop header
LB: loop body
LE: loop exit
PB: predicated region body
PF: predicated region fallthrough
CT: control target
= control target key end

     0   :  { %12 = vsyncpa [#allocation3], 0  ;;  %s922_s0 = inlined_call_operand.hbm [shape: f32[16,128], index: 0, kind: input, shape index: {}]   ;;  %s923_s1 = inlined_call_operand.hbm [shape: bf16[128,128], index: 1, kind: input, shape index: {}]   ;;  %s924_s2 = inlined_call_operand.vmem [shape: f32[1,128], index: 2, kind: input, shape index: {}]   ;;  %s925_s3 = inlined_call_operand.hbm [shape: bf16[128,128], index: 3, kind: input, shape index: {}]   ;;  %s926_s4 = inlined_call_operand.vmem [shape: f32[1,128], index: 4, kind: input, shape index: {}]   ;;  %s927_s5 = inlined_call_operand.hbm [shape: bf16[128,128], index: 5, kind: input, shape index: {}]   ;;  %s928_s6 = inlined_call_operand.vmem [shape: f32[1,128], index: 6, kind: input, shape index: {}]   ;;  %s929_s7 = inlined_call_operand.hbm [shape: f32[16,128], index: 7, kind: output, shape index: {}]  }
   0x1   :  { %13 = vsyncpa [#allocation6], 0 }
   0x2   :  { %14 = vsyncpa [#allocation9], 0 }
   0x3   :  { %15 = vsyncpa [#allocation4], 0  ;;  %s750_s24 = smov [#allocation5]   ;;  %s632_s28 = scalar_lea.hbm %s923_s1, 1024 }
   0x4   :  { %s33_s25 = sshll.u32 %s750_s24, 4  ;;  %p633_p0 = scmp.ne.s32.totalorder %s923_s1, %s632_s28  ;;  %s34_s25 = int_to_ptr.vmem [resolvable:$true] %s33_s25 }
   0x5   :  { %p636_p1 = scmp.lt.u32.totalorder %s632_s28, %s923_s1 }
   0x7   :  { %p638_p2 = pnand %p636_p1, %p633_p0 }
   0x9   :  { %641 = shalt.err (!%p638_p2)
}
   0xa   :  { %s642_s10 = scalar_lea.vmem %s34_s25, 1024  ;;  %p647_p4 = scmp.lt.s32.totalorder %s34_s25, %s34_s25 }
   0xb   :  { %p643_p3 = scmp.ne.s32.totalorder %s34_s25, %s642_s10  ;;  %p648_p5 = scmp.lt.s32.totalorder %s642_s10, %s642_s10 }
   0xd   :  { %p649_p6 = por %p648_p5, %p647_p4 }
   0xf   :  { %p650_p7 = pnand %p649_p6, %p643_p3 }
  0x11   :  { %653 = shalt.err (!%p650_p7)
}
  0x12   :  { %s751_s11 = smov 64   ;;  %s752_s12 = smov 4  }
  0x13   :  { %39 = dma.hbm_to_vmem [thread:$0]  %s923_s1, 1024, %s34_s25, [#allocation6], %s751_s11, %s751_s11, %s752_s12  }
  0x14   :  { %s753_s15 = smov [#allocation2]   ;;  %s654_s19 = scalar_lea.hbm %s922_s0, 256 }
  0x15   :  { %s21_s16 = sshll.u32 %s753_s15, 4  ;;  %p655_p8 = scmp.ne.s32.totalorder %s922_s0, %s654_s19  ;;  %s22_s16 = int_to_ptr.vmem [resolvable:$true] %s21_s16 }
  0x16   :  { %p658_p9 = scmp.lt.u32.totalorder %s654_s19, %s922_s0 }
  0x18   :  { %p660_p10 = pnand %p658_p9, %p655_p8 }
  0x1a   :  { %663 = shalt.err (!%p660_p10)
}
  0x1b   :  { %s664_s24 = scalar_lea.vmem %s22_s16, 256  ;;  %p669_p12 = scmp.lt.s32.totalorder %s22_s16, %s22_s16 }
  0x1c   :  { %p665_p11 = scmp.ne.s32.totalorder %s22_s16, %s664_s24  ;;  %p670_p13 = scmp.lt.s32.totalorder %s664_s24, %s664_s24 }
  0x1e   :  { %p671_p0 = por %p670_p13, %p669_p12 }
  0x20   :  { %p672_p1 = pnand %p671_p0, %p665_p11 }
  0x22   :  { %675 = shalt.err (!%p672_p1)
}
  0x23   :  { %s754_s1 = smov 128   ;;  %s755_s25 = smov 8  }
  0x24   :  { %27 = dma.hbm_to_vmem [thread:$0]  %s922_s0, 256, %s22_s16, [#allocation3], %s754_s1, %s754_s1, %s755_s25  }
  0x25   :  { %s756_s28 = smov [#allocation7]   ;;  %s757_s30 = smov [#allocation8]  }
  0x26   :  { %s47_s29 = sshll.u32 %s756_s28, 4  ;;  %s61_s8 = sshll.u32 %s757_s30, 4  ;;  %s48_s29 = int_to_ptr.vmem [resolvable:$true] %s47_s29  ;;  %s831_s8 = int_to_ptr.vmem [resolvable:$true] %s61_s8 }
  0x27   :  { %s676_s13 = scalar_lea.hbm %s925_s3, 1024 }
  0x28   :  { %p677_p2 = scmp.ne.s32.totalorder %s925_s3, %s676_s13  ;;  %p680_p3 = scmp.lt.u32.totalorder %s676_s13, %s925_s3 }
  0x2a   :  { %p682_p4 = pnand %p680_p3, %p677_p2 }
  0x2c   :  { %685 = shalt.err (!%p682_p4)
}
  0x2d   :  { %s686_s0 = scalar_lea.vmem %s48_s29, 1024  ;;  %p691_p6 = scmp.lt.s32.totalorder %s48_s29, %s48_s29 }
  0x2e   :  { %p687_p5 = scmp.ne.s32.totalorder %s48_s29, %s686_s0  ;;  %p692_p7 = scmp.lt.s32.totalorder %s686_s0, %s686_s0 }
  0x30   :  { %p693_p8 = por %p692_p7, %p691_p6 }
  0x32   :  { %p694_p9 = pnand %p693_p8, %p687_p5 }
  0x34   :  { %697 = shalt.err (!%p694_p9)
}
  0x35   :  { %53 = dma.hbm_to_vmem [thread:$0]  %s925_s3, 1024, %s48_s29, [#allocation6], %s751_s11, %s751_s11, %s752_s12  }
  0x36   :  { %s698_s22 = scalar_lea.hbm %s927_s5, 1024 }
  0x37   :  { %p699_p10 = scmp.ne.s32.totalorder %s927_s5, %s698_s22  ;;  %p702_p11 = scmp.lt.u32.totalorder %s698_s22, %s927_s5 }
  0x39   :  { %p704_p12 = pnand %p702_p11, %p699_p10 }
  0x3b   :  { %707 = shalt.err (!%p704_p12)
}
  0x3c   :  { %s708_s28 = scalar_lea.vmem %s831_s8, 1024  ;;  %p713_p0 = scmp.lt.s32.totalorder %s831_s8, %s831_s8 }
  0x3d   :  { %p709_p13 = scmp.ne.s32.totalorder %s831_s8, %s708_s28  ;;  %p714_p1 = scmp.lt.s32.totalorder %s708_s28, %s708_s28 }
  0x3f   :  { %p715_p2 = por %p714_p1, %p713_p0 }
  0x41   :  { %p716_p3 = pnand %p715_p2, %p709_p13 }
  0x43   :  { %719 = shalt.err (!%p716_p3)
}
  0x44   :  { %67 = dma.hbm_to_vmem [thread:$0]  %s927_s5, 1024, %s831_s8, [#allocation9], %s751_s11, %s751_s11, %s752_s12  }
  0x45   :  { %742 = dma.done.wait [#allocation3], 256  }
  0x46   :  { %743 = vsyncadd [#allocation3], 4294967040 }
  0x47   :  { %744 = dma.done.wait [#allocation6], 2048  }
  0x48   :  { %745 = vsyncadd [#allocation6], 4294965248 }
  0x49   :  { %746 = dma.done.wait [#allocation9], 1024  }
  0x4a   :  { %747 = vsyncadd [#allocation9], 4294966272  ;;  %v758_v0 = vmov 0.0   ;;  %vm759_vm0 = vmmov 0   ;;  %v592_v1 = vld [vmem:[#allocation5] sm:$0xff]   ;;  %v593_v2 = vld [vmem:[#allocation5 + $0x8] sm:$0xff]  }
  0x4b   :  { %521 = vmatprep.subr.bf16.mxu0 %v758_v0  ;;  %537 = vmatprep.mubr.msk.bf16.mxu0 %vm759_vm0, %v758_v0  ;;  %v594_v3 = vld [vmem:[#allocation5 + $0x10] sm:$0xff]   ;;  %v600_v4 = vld [vmem:[#allocation7] sm:$0xff]   ;;  %v595_v5 = vld [vmem:[#allocation5 + $0x18] sm:$0xff]  }
  0x4c   :  { %541 = vmatprep.subr.bf16.mxu1 %v758_v0  ;;  %557 = vmatprep.mubr.msk.bf16.mxu1 %vm759_vm0, %v758_v0  ;;  %v601_v6 = vld [vmem:[#allocation7 + $0x8] sm:$0xff]   ;;  %v596_v7 = vld [vmem:[#allocation5 + $0x20] sm:$0xff]   ;;  %v602_v8 = vld [vmem:[#allocation7 + $0x10] sm:$0xff]  }
  0x4d   :  { %522 = vmatpush3.bf16.msra.mxu0 %v592_v1  ;;  %542 = vmatpush3.bf16.msra.mxu1 %v600_v4  ;;  %v597_v9 = vld [vmem:[#allocation5 + $0x28] sm:$0xff]   ;;  %v603_v10 = vld [vmem:[#allocation7 + $0x18] sm:$0xff]   ;;  %v598_v11 = vld [vmem:[#allocation5 + $0x30] sm:$0xff]  }
  0x4e   :  { %523 = vmatprep.subr.bf16.mxu0 %v758_v0  ;;  %543 = vmatprep.subr.bf16.mxu1 %v758_v0  ;;  %v599_v12 = vld [vmem:[#allocation5 + $0x38] sm:$0xff]   ;;  %v83_v13 = vld [vmem:[#allocation2] sm:$0xff]  ;;  %v604_v16 = vld [vmem:[#allocation7 + $0x20] sm:$0xff]  }
  0x4f   :  { %v84_v14 = vld [vmem:[#allocation2 + $0x8] sm:$0xff]  ;;  %v605_v17 = vld [vmem:[#allocation7 + $0x28] sm:$0xff]   ;;  %v606_v18 = vld [vmem:[#allocation7 + $0x30] sm:$0xff]  }
  0x50   :  { %v85_v15 = vpack.c.bf16 %v84_v14, %v83_v13  ;;  %v607_v19 = vld [vmem:[#allocation7 + $0x38] sm:$0xff]   ;;  %v608_v20 = vld [vmem:[#allocation8] sm:$0xff]   ;;  %v609_v21 = vld [vmem:[#allocation8 + $0x8] sm:$0xff]  }
  0x51   :  { %524 = vmatpush3.bf16.msra.mxu0 %v593_v2  ;;  %544 = vmatpush3.bf16.msra.mxu1 %v601_v6  ;;  %v610_v22 = vld [vmem:[#allocation8 + $0x10] sm:$0xff]   ;;  %v611_v23 = vld [vmem:[#allocation8 + $0x18] sm:$0xff]   ;;  %v612_v34 = vld [vmem:[#allocation8 + $0x20] sm:$0xff]  }
  0x52   :  { %525 = vmatprep.subr.bf16.mxu0 %v758_v0  ;;  %545 = vmatprep.subr.bf16.mxu1 %v758_v0  ;;  %v467_v24 = vld [vmem:[%s924_s2] ss:$0 sm:$0xff]  ;;  %v613_v35 = vld [vmem:[#allocation8 + $0x28] sm:$0xff]   ;;  %v615_v37 = vld [vmem:[#allocation8 + $0x38] sm:$0xff]  }
  0x53   :  { %v614_v36 = vld [vmem:[#allocation8 + $0x30] sm:$0xff]  }
  0x54   :  { %v476_v38 = vld [vmem:[%s926_s4] ss:$0 sm:$0xff]  ;;  %s760_s4 = smov [#allocation10]  }
  0x55   :  { %526 = vmatpush3.bf16.msra.mxu0 %v594_v3  ;;  %546 = vmatpush3.bf16.msra.mxu1 %v602_v8  ;;  %v485_v48 = vld [vmem:[%s928_s6] ss:$0 sm:$0xff]  ;;  %s453_s6 = sshll.u32 %s760_s4, 4  ;;  %s454_s6 = int_to_ptr.vmem [resolvable:$true] %s453_s6 }
  0x56   :  { %527 = vmatprep.subr.bf16.mxu0 %v758_v0  ;;  %547 = vmatprep.subr.bf16.mxu1 %v758_v0  ;;  %s720_s9 = scalar_lea.vmem %s454_s6, 256  ;;  %p725_p5 = scmp.lt.s32.totalorder %s454_s6, %s454_s6 }
  0x57   :  { %p721_p4 = scmp.ne.s32.totalorder %s454_s6, %s720_s9  ;;  %p726_p6 = scmp.lt.s32.totalorder %s720_s9, %s720_s9 }
  0x59   :  { %528 = vmatpush3.bf16.msra.mxu0 %v595_v5  ;;  %548 = vmatpush3.bf16.msra.mxu1 %v603_v10  ;;  %p727_p7 = por %p726_p6, %p725_p5 }
  0x5a   :  { %529 = vmatprep.subr.bf16.mxu0 %v758_v0  ;;  %549 = vmatprep.subr.bf16.mxu1 %v758_v0 }
  0x5b   :  { %p728_p8 = pnand %p727_p7, %p721_p4 }
  0x5d   :  { %530 = vmatpush3.bf16.msra.mxu0 %v596_v7  ;;  %550 = vmatpush3.bf16.msra.mxu1 %v604_v16 }
  0x5e   :  { %531 = vmatprep.subr.bf16.mxu0 %v758_v0  ;;  %551 = vmatprep.subr.bf16.mxu1 %v758_v0 }
  0x61   :  { %532 = vmatpush3.bf16.msra.mxu0 %v597_v9  ;;  %552 = vmatpush3.bf16.msra.mxu1 %v605_v17 }
  0x62   :  { %533 = vmatprep.subr.bf16.mxu0 %v758_v0  ;;  %553 = vmatprep.subr.bf16.mxu1 %v758_v0 }
  0x65   :  { %534 = vmatpush3.bf16.msra.mxu0 %v598_v11  ;;  %554 = vmatpush3.bf16.msra.mxu1 %v606_v18 }
  0x66   :  { %535 = vmatprep.subr.bf16.mxu0 %v758_v0  ;;  %555 = vmatprep.subr.bf16.mxu1 %v758_v0 }
  0x69   :  { %536 = vmatpush3.bf16.msra.mxu0 %v599_v12  ;;  %556 = vmatpush3.bf16.msra.mxu1 %v607_v19 }
  0x6a   :  { %561 = vmatprep.subr.bf16.mxu0 %v758_v0 }
  0x6c   :  { %538 = vmatmul.mubr.bf16.vlgmr.msra.gmra.mrb[0].mxu0 %v85_v15 }
  0x6d   :  { %577 = vmatprep.mubr.msk.bf16.mxu0 %vm759_vm0, %v758_v0  ;;  %562 = vmatpush3.bf16.msra.mxu0 %v608_v20 }
  0x6e   :  { %563 = vmatprep.subr.bf16.mxu0 %v758_v0 }
  0x71   :  { %564 = vmatpush3.bf16.msra.mxu0 %v609_v21 }
  0x72   :  { %565 = vmatprep.subr.bf16.mxu0 %v758_v0 }
  0x75   :  { %566 = vmatpush3.bf16.msra.mxu0 %v610_v22 }
  0x76   :  { %567 = vmatprep.subr.bf16.mxu0 %v758_v0 }
  0x79   :  { %568 = vmatpush3.bf16.msra.mxu0 %v611_v23 }
  0x7a   :  { %569 = vmatprep.subr.bf16.mxu0 %v758_v0 }
  0x7d   :  { %570 = vmatpush3.bf16.msra.mxu0 %v612_v34 }
  0x7e   :  { %571 = vmatprep.subr.bf16.mxu0 %v758_v0 }
  0x81   :  { %572 = vmatpush3.bf16.msra.mxu0 %v613_v35 }
  0x82   :  { %573 = vmatprep.subr.bf16.mxu0 %v758_v0 }
  0x85   :  { %574 = vmatpush3.bf16.msra.mxu0 %v614_v36 }
  0x86   :  { %575 = vmatprep.subr.bf16.mxu0 %v758_v0 }
  0x89   :  { %576 = vmatpush3.bf16.msra.mxu0 %v615_v37 }
 0x13f   :  { %v191_v25 = vpop.f32.mrb[0].mxu0 }
 0x140   :  { %v192_v26 = vadd.f32 %v467_v24, %v191_v25  ;;  %v539_v27 = vpop.f32.mrb[1].mxu0 }
 0x141   :  { %v194_v28 = vpop.f32.mrb[2].mxu0 }
 0x142   :  { %v195_v29 = vadd.f32 %v467_v24, %v194_v28  ;;  %v540_v30 = vpop.f32.mrb[3].mxu0  ;;  %616 = vtanh.f32 %v192_v26 }
 0x144   :  { %618 = vtanh.f32 %v195_v29 }
 0x14c   :  { %v617_v31 = vpop.eup %616 }
 0x14e   :  { %v619_v32 = vpop.eup %618 }
 0x14f   :  { %v200_v33 = vpack.c.bf16 %v619_v32, %v617_v31 }
 0x151   :  { %558 = vmatmul.mubr.bf16.vlgmr.msra.gmra.mrb[0].mxu1 %v200_v33 }
 0x224   :  { %v306_v39 = vpop.f32.mrb[0].mxu1 }
 0x225   :  { %v307_v40 = vadd.f32 %v476_v38, %v306_v39  ;;  %v559_v41 = vpop.f32.mrb[1].mxu1 }
 0x226   :  { %v309_v42 = vpop.f32.mrb[2].mxu1 }
 0x227   :  { %v310_v43 = vadd.f32 %v476_v38, %v309_v42  ;;  %v560_v44 = vpop.f32.mrb[3].mxu1  ;;  %620 = vtanh.f32 %v307_v40 }
 0x229   :  { %622 = vtanh.f32 %v310_v43 }
 0x231   :  { %v621_v45 = vpop.eup %620 }
 0x233   :  { %v623_v46 = vpop.eup %622 }
 0x234   :  { %v315_v47 = vpack.c.bf16 %v623_v46, %v621_v45 }
 0x236   :  { %578 = vmatmul.mubr.bf16.vlgmr.msra.gmra.mrb[4].mxu0 %v315_v47 }
 0x309   :  { %v421_v49 = vpop.f32.mrb[4].mxu0 }
 0x30a   :  { %v422_v50 = vadd.f32 %v485_v48, %v421_v49  ;;  %v579_v51 = vpop.f32.mrb[5].mxu0 }
 0x30b   :  { %v424_v52 = vpop.f32.mrb[6].mxu0 }
 0x30c   :  { %428 = vmax.xlane.f32.xlu0 %v422_v50  ;;  %v580_v53 = vpop.f32.mrb[7].mxu0  ;;  %v425_v54 = vadd.f32 %v485_v48, %v424_v52 }
 0x310   :  { %430 = vmax.xlane.f32.xlu0 %v425_v54 }
 0x399   :  { %v429_v55 = vpop.xlane.xlu0 %428 }
 0x39a   :  { %v432_v56 = vsub.f32 %v422_v50, %v429_v55 }
 0x39c   :  { %v434_v57 = vmul.f32 1.442695, %v432_v56 }
 0x39d   :  { %v431_v58 = vpop.xlane.xlu0 %430 }
 0x39e   :  { %624 = vpow2.f32 %v434_v57  ;;  %v433_v59 = vsub.f32 %v425_v54, %v431_v58 }
 0x3a0   :  { %v436_v60 = vmul.f32 1.442695, %v433_v59 }
 0x3a2   :  { %626 = vpow2.f32 %v436_v60 }
 0x3a8   :  { %v625_v61 = vpop.eup %624 }
 0x3a9   :  { %438 = vadd.xlane.f32.xlu1 %v625_v61 }
 0x3ac   :  { %v627_v62 = vpop.eup %626 }
 0x3ad   :  { %440 = vadd.xlane.f32.xlu1 %v627_v62 }
 0x436   :  { %v439_v63 = vpop.xlane.xlu1 %438 }
 0x437   :  { %628 = vrcp.f32 %v439_v63 }
 0x43a   :  { %v441_v0 = vpop.xlane.xlu1 %440 }
 0x43b   :  { %630 = vrcp.f32 %v441_v0 }
 0x441   :  { %v629_v1 = vpop.eup %628 }
 0x442   :  { %v443_v2 = vmul.f32 %v629_v1, %v625_v61 }
 0x444   :  { %446 = vst [vmem:[#allocation10] sm:$0xff] %v443_v2 }
 0x445   :  { %v631_v3 = vpop.eup %630 }
 0x446   :  { %v445_v4 = vmul.f32 %v631_v3, %v627_v62 }
 0x448   :  { %447 = vst [vmem:[#allocation10 + $0x8] sm:$0xff] %v445_v4 }
 0x449   :  { %731 = shalt.err (!%p728_p8)
}
 0x44a   :  { %s732_s14 = scalar_lea.hbm %s929_s7, 256 }
 0x44b   :  { %p733_p9 = scmp.ne.s32.totalorder %s929_s7, %s732_s14  ;;  %p736_p10 = scmp.lt.u32.totalorder %s732_s14, %s929_s7 }
 0x44d   :  { %p738_p11 = pnand %p736_p10, %p733_p9 }
 0x44f   :  { %741 = shalt.err (!%p738_p11)
}
 0x450   :  { %459 = dma.vmem_to_hbm [thread:$0]  %s454_s6, 256, %s929_s7, [#allocation4], %s754_s1, %s754_s1, %s755_s25  }
 0x451   :  { %748 = dma.done.wait [#allocation4], 256  }
 0x452   :  { %749 = vsyncadd [#allocation4], 4294967040 }
 0x453   :  { %463 = vsyncpa [#allocation3], 1 }
 0x454   :  { %464 = vsyncpa [#allocation6], 1 }
 0x455   :  { %465 = vsyncpa [#allocation9], 1 }
 0x456   :  { %466 = vsyncpa [#allocation4], 1 }

</bundles_post_ra>
